<compile_context>
chip_gen: v6e
topology: v6e:2x2x1
jax: 0.10.0
libtpu: 0.0.40
codegen_flags: <defaults>
</compile_context>

<pallas_src>
import jax
import jax.numpy as jnp
from jax import lax
from jax.experimental import pallas as pl
from jax.experimental.pallas import tpu as pltpu


def _round_up(a, m):
    return ((a + m - 1) // m) * m


def _choose_tile(batch, tb_max=512):
    """Examples per grid step. Large tiles amortize the ~0.35us/step pipeline
    overhead; for batches above tb_max aim for an even tile count so the
    ("parallel",) grid axis balances across v7x's two TensorCores."""
    if batch <= tb_max:
        return _round_up(max(batch, 1), 8)
    n_tiles = -(-batch // tb_max)          # ceil
    if n_tiles % 2:
        n_tiles += 1
    return _round_up(-(-batch // n_tiles), 8)


def _model_kernel(ids_ref, s_ref, w2_ref, b2_ref, out_ref):
    # ids_ref : (L*TB, 1) int32  -- position-major ids (pos p occupies rows [p*TB,(p+1)*TB))
    # s_ref   : (V+1, D) f32     -- precomputed sigmoid(E @ W1 + b1), grid-invariant
    # w2_ref  : (D, 3) f32,  b2_ref : (1, 3) f32
    # out_ref : (TB, 3) f32
    n_rows = ids_ref.shape[0]        # L * TB (static)
    tb = out_ref.shape[0]            # TB (static)
    seq = n_rows // tb               # L (static)
    v1 = s_ref.shape[0]              # vocab + 1 (static)

    # Embedding+Linear+sigmoid fused as a one-hot row-select against the folded
    # S table: exact tiny MXU matmul (K = V+1 = 21), no (TB*L, D) sigmoid and
    # only one per-row matmul.  Out-of-range ids yield an all-zero row
    # (nn.Embedding would raise) -- documented deviation.
    ids = ids_ref[...]                                                    # (L*TB, 1)
    onehot = (ids == lax.broadcasted_iota(jnp.int32, (n_rows, v1), 1))
    h = jnp.dot(onehot.astype(jnp.float32), s_ref[...],
                preferred_element_type=jnp.float32)                      # (L*TB, D)

    # MaxPool1d(char_len) over the sequence: position-major layout makes this an
    # elementwise max of L sublane-aligned (TB, D) slabs (pure VPU, no XLU).
    # TODO(synk): assumes L == char_len (single full-sequence max window).
    pooled = jnp.max(h.reshape(seq, tb, -1), axis=0)                      # (TB, D)

    # nn.Linear(input_dim, 3) + final sigmoid (tiny, negligible EUP cost).
    logits = jnp.dot(pooled, w2_ref[...],
                     preferred_element_type=jnp.float32) + b2_ref[...]    # (TB, 3)
    out_ref[...] = jax.nn.sigmoid(logits)


def torchmodel_forward(x, emb_table, w1, b1, w2, b2):
    """Forward pass of `torchmodel` with y=None (returns y_pre, shape (B, 3)).

    Eval-mode semantics: nn.Dropout(0.2) is identity, which makes the
    first-layer fold S = sigmoid(E @ W1 + b1) exact.
    TODO(synk): training-mode dropout (p=0.2) not implemented (eval semantics).
    """
    B, L = x.shape
    V1, D = emb_table.shape
    n_cls = w2.shape[1]

    # Whole first layer folded into a (V+1, D) table, built once by plain XLA.
    s_table = jax.nn.sigmoid(
        emb_table.astype(jnp.float32) @ w1.astype(jnp.float32)
        + b1.reshape(1, D).astype(jnp.float32))

    TB = _choose_tile(B)
    B_pad = _round_up(B, TB)
    grid = B_pad // TB

    ids = x.astype(jnp.int32)
    if B_pad != B:
        ids = jnp.pad(ids, ((0, B_pad - B), (0, 0)))   # pad with token 0 (valid row)
    # Position-major within each tile: row index = tile*L*TB + pos*TB + example.
    ids_pm = ids.reshape(grid, TB, L).transpose(0, 2, 1).reshape(grid * L * TB, 1)

    b2_2d = b2.reshape(1, n_cls).astype(jnp.float32)
    n_rows = L * TB

    out = pl.pallas_call(
        _model_kernel,
        out_shape=jax.ShapeDtypeStruct((B_pad, n_cls), jnp.float32),
        grid_spec=pltpu.PrefetchScalarGridSpec(
            num_scalar_prefetch=0,
            grid=(grid,),
            in_specs=[
                pl.BlockSpec((n_rows, 1), lambda i: (i, 0)),   # token ids per tile
                pl.BlockSpec((V1, D), lambda i: (0, 0)),       # folded S table (resident)
                pl.BlockSpec((D, n_cls), lambda i: (0, 0)),    # w2 (grid-invariant)
                pl.BlockSpec((1, n_cls), lambda i: (0, 0)),    # b2
            ],
            out_specs=pl.BlockSpec((TB, n_cls), lambda i: (i, 0)),
        ),
        compiler_params=pltpu.CompilerParams(
            dimension_semantics=("parallel",)),                # megacore sharding on v7x
    )(ids_pm, s_table, w2.astype(jnp.float32), b2_2d)
    return out[:B]


def _reference(x, emb_table, w1, b1, w2, b2):
    h = jax.nn.sigmoid(jnp.take(emb_table, x, axis=0) @ w1 + b1)
    return jax.nn.sigmoid(jnp.max(h, axis=1) @ w2 + b2)


if __name__ == "__main__":
    # Shapes consistent with the module's __init__:
    #   input_dim=32, char_len=8, len(vocab)=20  -> embedding (21, 32)
    B, L, D, V, N_CLS = 2, 8, 32, 20, 3
    key = jax.random.PRNGKey(0)
    k_x, k_emb, k_w1, k_b1, k_w2, k_b2, k_x2 = jax.random.split(key, 7)

    x = jax.random.randint(k_x, (B, L), 0, V + 1, dtype=jnp.int32)
    emb_table = jax.random.normal(k_emb, (V + 1, D), dtype=jnp.float32) * 0.1
    w1 = jax.random.normal(k_w1, (D, D), dtype=jnp.float32) * 0.1      # (in, out)
    b1 = jax.random.normal(k_b1, (D,), dtype=jnp.float32) * 0.1
    w2 = jax.random.normal(k_w2, (D, N_CLS), dtype=jnp.float32) * 0.1  # (in, out)
    b2 = jax.random.normal(k_b2, (N_CLS,), dtype=jnp.float32) * 0.1

    # Tiny batch (single grid step, padded to a sublane multiple).
    y_pre = jax.block_until_ready(torchmodel_forward(x, emb_table, w1, b1, w2, b2))
    ref = _reference(x, emb_table, w1, b1, w2, b2)
    assert y_pre.shape == (B, N_CLS)
    assert jnp.allclose(y_pre, ref, atol=1e-5), "mismatch vs reference (B=2)"

    # Larger batch exercising the multi-tile grid (even grid=2) + padding path.
    B2 = 600
    x2 = jax.random.randint(k_x2, (B2, L), 0, V + 1, dtype=jnp.int32)
    y2 = jax.block_until_ready(torchmodel_forward(x2, emb_table, w1, b1, w2, b2))
    ref2 = _reference(x2, emb_table, w1, b1, w2, b2)
    assert y2.shape == (B2, N_CLS)
    assert jnp.allclose(y2, ref2, atol=1e-5), "mismatch vs reference (B=600)"

    print("KERNEL_OK")
</pallas_src>

<mosaic_0001>
module attributes {stable_mosaic.version = 11 : i64} {
  func.func @_model_kernel(%arg0: i32, %arg1: memref<64x1xi32, #tpu.memory_space<vmem>>, %arg2: memref<21x32xf32, #tpu.memory_space<vmem>>, %arg3: memref<32x3xf32, #tpu.memory_space<vmem>>, %arg4: memref<1x3xf32, #tpu.memory_space<vmem>>, %arg5: memref<8x3xf32, #tpu.memory_space<vmem>>) attributes {dimension_semantics = [#tpu.dimension_semantics<parallel>], iteration_bounds = array<i64: 1>, scalar_prefetch = 0 : i64, scratch_operands = 0 : i64, tpu.core_type = #tpu.core_type<tc>, window_params = [{transform_indices = @transform_0, window_bounds = array<i64: 64, 1>}, {pipeline_mode = #tpu.pipeline_mode<synchronous>, transform_indices = @transform_1, window_bounds = array<i64: 21, 32>}, {pipeline_mode = #tpu.pipeline_mode<synchronous>, transform_indices = @transform_2, window_bounds = array<i64: 32, 3>}, {pipeline_mode = #tpu.pipeline_mode<synchronous>, transform_indices = @transform_3, window_bounds = array<i64: 1, 3>}, {transform_indices = @transform_4, window_bounds = array<i64: 8, 3>}]} {
    %c0 = arith.constant 0 : index
    %c0_0 = arith.constant 0 : index
    %0 = vector.load %arg1[%c0, %c0_0] : memref<64x1xi32, #tpu.memory_space<vmem>>, vector<64x1xi32>
    %1 = tpu.iota {dimensions = array<i32: 1>} : vector<64x21xi32>
    %2 = vector.broadcast %0 : vector<64x1xi32> to vector<64x21xi32>
    %3 = arith.cmpi eq, %2, %1 : vector<64x21xi32>
    %4 = arith.extui %3 : vector<64x21xi1> to vector<64x21xi32>
    %5 = arith.sitofp %4 : vector<64x21xi32> to vector<64x21xf32>
    %c0_1 = arith.constant 0 : index
    %c0_2 = arith.constant 0 : index
    %6 = vector.load %arg2[%c0_1, %c0_2] : memref<21x32xf32, #tpu.memory_space<vmem>>, vector<21x32xf32>
    %cst = arith.constant dense<0.000000e+00> : vector<64x32xf32>
    %7 = tpu.matmul %5, %6, %cst {dimension_numbers = #tpu.dot_dimension_numbers<[1], [0], [0], [1], [0, 0, 1, 1], [], []>} : vector<64x21xf32>, vector<21x32xf32>, vector<64x32xf32> -> vector<64x32xf32>
    %8 = vector.shape_cast %7 : vector<64x32xf32> to vector<8x8x32xf32>
    %cst_3 = arith.constant dense<0xFF800000> : vector<8x32xf32>
    %9 = vector.multi_reduction <maximumf>, %8, %cst_3 [0] : vector<8x8x32xf32> to vector<8x32xf32>
    %c0_4 = arith.constant 0 : index
    %c0_5 = arith.constant 0 : index
    %10 = vector.load %arg3[%c0_4, %c0_5] : memref<32x3xf32, #tpu.memory_space<vmem>>, vector<32x3xf32>
    %cst_6 = arith.constant dense<0.000000e+00> : vector<8x3xf32>
    %11 = tpu.matmul %9, %10, %cst_6 {dimension_numbers = #tpu.dot_dimension_numbers<[1], [0], [0], [1], [0, 0, 1, 1], [], []>} : vector<8x32xf32>, vector<32x3xf32>, vector<8x3xf32> -> vector<8x3xf32>
    %c0_7 = arith.constant 0 : index
    %c0_8 = arith.constant 0 : index
    %12 = vector.load %arg4[%c0_7, %c0_8] : memref<1x3xf32, #tpu.memory_space<vmem>>, vector<1x3xf32>
    %13 = vector.broadcast %12 : vector<1x3xf32> to vector<8x3xf32>
    %14 = arith.addf %11, %13 : vector<8x3xf32>
    %15 = arith.negf %14 : vector<8x3xf32>
    %16 = math.exp %15 : vector<8x3xf32>
    %cst_9 = arith.constant 1.000000e+00 : f32
    %17 = vector.broadcast %cst_9 : f32 to vector<8x3xf32>
    %18 = arith.addf %17, %16 : vector<8x3xf32>
    %19 = arith.divf %17, %18 : vector<8x3xf32>
    %c0_10 = arith.constant 0 : index
    %c0_11 = arith.constant 0 : index
    %20 = vector.load %arg5[%c0_10, %c0_11] : memref<8x3xf32, #tpu.memory_space<vmem>>, vector<8x3xf32>
    tpu.vector_store %arg5[%c0_10, %c0_11], %19 {strides = array<i32>} : memref<8x3xf32, #tpu.memory_space<vmem>>, vector<8x3xf32>,
    return
  }
  func.func @transform_0(%arg0: i32) -> (i32, i32) {
    %c0_i32 = arith.constant 0 : i32
    %c0_i32_0 = arith.constant 0 : i32
    return %arg0, %c0_i32 : i32, i32
  }
  func.func @transform_1(%arg0: i32) -> (i32, i32) {
    %c0_i32 = arith.constant 0 : i32
    %c0_i32_0 = arith.constant 0 : i32
    %c0_i32_1 = arith.constant 0 : i32
    return %c0_i32, %c0_i32_0 : i32, i32
  }
  func.func @transform_2(%arg0: i32) -> (i32, i32) {
    %c0_i32 = arith.constant 0 : i32
    %c0_i32_0 = arith.constant 0 : i32
    %c0_i32_1 = arith.constant 0 : i32
    return %c0_i32, %c0_i32_0 : i32, i32
  }
  func.func @transform_3(%arg0: i32) -> (i32, i32) {
    %c0_i32 = arith.constant 0 : i32
    %c0_i32_0 = arith.constant 0 : i32
    %c0_i32_1 = arith.constant 0 : i32
    return %c0_i32, %c0_i32_0 : i32, i32
  }
  func.func @transform_4(%arg0: i32) -> (i32, i32) {
    %c0_i32 = arith.constant 0 : i32
    %c0_i32_0 = arith.constant 0 : i32
    return %arg0, %c0_i32 : i32, i32
  }
}

</mosaic_0001>

<bundles_post_ra>
// kernel: tpu_custom_call.1
= control target key start
LH: loop header
LB: loop body
LE: loop exit
PB: predicated region body
PF: predicated region fallthrough
CT: control target
= control target key end

     0   :  { %v398_v0 = vmov 0   ;;  %vm103_vm0 = vcmask 1044480   ;;  %v399_v6 = vmov 0.0   ;;  %v25_v13 = vlaneseq  ;;  %s507_s0 = inlined_call_operand.vmem [shape: s32[64,1], index: 0, kind: input, shape index: {}]   ;;  %s508_s1 = inlined_call_operand.vmem [shape: f32[21,32], index: 1, kind: input, shape index: {}]   ;;  %s509_s2 = inlined_call_operand.vmem [shape: f32[32,3], index: 2, kind: input, shape index: {}]   ;;  %s510_s3 = inlined_call_operand.vmem [shape: f32[1,3], index: 3, kind: input, shape index: {}]   ;;  %s511_s4 = inlined_call_operand.vmem [shape: f32[8,3], index: 4, kind: output, shape index: {}]  }
   0x1   :  { %393 = vset.pattern.permute.xlu1 %v398_v0  ;;  %392 = vset.pattern.permute.xlu0 %v398_v0  ;;  %v19_v1 = vld [vmem:[%s507_s0 + $0x10] sm:$0xff]  ;;  %v17_v2 = vld [vmem:[%s507_s0] sm:$0xff]  ;;  %v20_v3 = vld [vmem:[%s507_s0 + $0x18] sm:$0xff]  ;;  %vm78_vm1 = vcmask 171008   ;;  %vm400_vm10 = vmmov 0   ;;  %vm212_vm11 = vcmask 261120  }
   0x2   :  { %34 = vperm.xlu1 %393, %v19_v1   ;;  %28 = vperm.xlu0 %392, %v17_v2   ;;  %v18_v4 = vld [vmem:[%s507_s0 + $0x8] sm:$0xff]  ;;  %v77_v5 = vld [vmem:[%s508_s1 + $0x10] sm:$0x1f]  ;;  %v75_v8 = vld [vmem:[%s508_s1] sm:$0xff]  ;;  %v26_v14 = vand.u32 127, %v25_v13  ;;  %vm318_vm12 = vcmask 23552  }
   0x3   :  { %378 = vmatprep.subr.mxu1 %v399_v6  ;;  %360 = vmatprep.subr.msk.mxu0 %vm103_vm0, %v77_v5  ;;  %v76_v7 = vld [vmem:[%s508_s1 + $0x8] sm:$0xff]  ;;  %v21_v10 = vld [vmem:[%s507_s0 + $0x20] sm:$0xff]  ;;  %v24_v11 = vld [vmem:[%s507_s0 + $0x38] sm:$0xff] }
   0x4   :  { %361 = vmatpush3.msk.msra.mxu0 %vm103_vm0, %v77_v5  ;;  %v22_v9 = vld [vmem:[%s507_s0 + $0x28] sm:$0xff]  ;;  %v23_v12 = vld [vmem:[%s507_s0 + $0x30] sm:$0xff]  ;;  %v231_v31 = vld [vmem:[%s509_s2 + $0x18] sm:$0xff]  ;;  %386 = vmatprep.mubr.msk.f32.mxu1 %vm400_vm10, %v399_v6 }
   0x5   :  { %362 = vmatprep.subr.mxu0 %v76_v7  ;;  %379 = vmatpush3.msra.mxu1 %v231_v31  ;;  %v230_v32 = vld [vmem:[%s509_s2 + $0x10] sm:$0xff]  ;;  %v229_v33 = vld [vmem:[%s509_s2 + $0x8] sm:$0xff]  ;;  %v228_v34 = vld [vmem:[%s509_s2] sm:$0xff] }
   0x6   :  { %37 = vperm.xlu1 %393, %v20_v3   ;;  %31 = vperm.xlu0 %392, %v18_v4   ;;  %v341_v58 = vld [vmem:[%s510_s3] ss:$0 sm:$0xff] }
   0x7   :  { %363 = vmatpush3.msra.mxu0 %v76_v7  ;;  %380 = vmatprep.subr.mxu1 %v399_v6 }
   0x8   :  { %364 = vmatprep.subr.mxu0 %v75_v8  ;;  %381 = vmatpush3.msra.mxu1 %v230_v32 }
   0x9   :  { %365 = vmatpush3.msra.mxu0 %v75_v8  ;;  %382 = vmatprep.subr.mxu1 %v399_v6 }
   0xa   :  { %43 = vperm.xlu1 %393, %v22_v9   ;;  %40 = vperm.xlu0 %392, %v21_v10  }
   0xb   :  { %383 = vmatpush3.msra.mxu1 %v229_v33 }
   0xc   :  { %384 = vmatprep.subr.mxu1 %v399_v6 }
   0xd   :  { %385 = vmatpush3.msra.mxu1 %v228_v34 }
   0xe   :  { %49 = vperm.xlu1 %393, %v24_v11   ;;  %46 = vperm.xlu0 %392, %v23_v12  }
  0x7d   :  { %v35_v15 = vpop.permute.xlu1 %34  ;;  %v29_v16 = vpop.permute.xlu0 %28 }
  0x7e   :  { %vm51_vm2 = vcmp.eq.s32.totalorder %v29_v16, %v26_v14  ;;  %vm53_vm3 = vcmp.eq.s32.totalorder %v35_v15, %v26_v14 }
  0x7f   :  { %v324_v17 = vsel %vm51_vm2, 1.0, %v399_v6  ;;  %v326_v20 = vsel %vm53_vm3, 1.0, %v399_v6 }
  0x80   :  { %366 = vmatprep.mubr.msk.f32.mxu0 %vm78_vm1, %v324_v17 }
  0x81   :  { %v38_v18 = vpop.permute.xlu1 %37  ;;  %v32_v19 = vpop.permute.xlu0 %31 }
  0x82   :  { %vm52_vm4 = vcmp.eq.s32.totalorder %v32_v19, %v26_v14  ;;  %vm54_vm5 = vcmp.eq.s32.totalorder %v38_v18, %v26_v14 }
  0x83   :  { %v325_v21 = vsel %vm52_vm4, 1.0, %v399_v6  ;;  %v327_v24 = vsel %vm54_vm5, 1.0, %v399_v6 }
  0x84   :  { %367 = vmatmul.mubr.msk.f32.vlgmr.msra.gmra.mxu0 %vm78_vm1, %v325_v21 }
  0x85   :  { %v44_v22 = vpop.permute.xlu1 %43  ;;  %369 = vmatprep.mubr.msk.f32.mxu0 %vm78_vm1, %v326_v20  ;;  %v41_v23 = vpop.permute.xlu0 %40 }
  0x86   :  { %vm55_vm6 = vcmp.eq.s32.totalorder %v41_v23, %v26_v14  ;;  %vm56_vm7 = vcmp.eq.s32.totalorder %v44_v22, %v26_v14 }
  0x87   :  { %v328_v25 = vsel %vm55_vm6, 1.0, %v399_v6  ;;  %v329_v28 = vsel %vm56_vm7, 1.0, %v399_v6 }
  0x88   :  { %370 = vmatmul.mubr.msk.f32.gmra.mxu0 %vm78_vm1, %v327_v24 }
  0x89   :  { %v50_v26 = vpop.permute.xlu1 %49  ;;  %372 = vmatprep.mubr.msk.f32.mxu0 %vm78_vm1, %v328_v25  ;;  %v47_v27 = vpop.permute.xlu0 %46 }
  0x8a   :  { %vm57_vm8 = vcmp.eq.s32.totalorder %v47_v27, %v26_v14  ;;  %vm58_vm9 = vcmp.eq.s32.totalorder %v50_v26, %v26_v14 }
  0x8b   :  { %v330_v29 = vsel %vm57_vm8, 1.0, %v399_v6  ;;  %v331_v30 = vsel %vm58_vm9, 1.0, %v399_v6 }
  0x8c   :  { %373 = vmatmul.mubr.msk.f32.gmra.mxu0 %vm78_vm1, %v329_v28 }
  0x8d   :  { %375 = vmatprep.mubr.msk.f32.mxu0 %vm78_vm1, %v330_v29 }
  0x90   :  { %376 = vmatmul.mubr.msk.f32.gmra.mxu0 %vm78_vm1, %v331_v30 }
 0x144   :  { %v368_v35 = vpop.f32.mrf.mxu0 }
 0x145   :  { %v214_v48 = vsel %vm212_vm11, %v368_v35, -inf }
 0x146   :  { %v173_v36 = vpop.f32.mrf.mxu0 }
 0x147   :  { %v213_v43 = vsel %vm212_vm11, %v173_v36, -inf }
 0x148   :  { %v371_v37 = vpop.f32.mrf.mxu0 }
 0x149   :  { %v216_v49 = vsel %vm212_vm11, %v371_v37, -inf }
 0x14a   :  { %v183_v38 = vpop.f32.mrf.mxu0 }
 0x14b   :  { %v215_v50 = vsel %vm212_vm11, %v183_v38, -inf }
 0x14c   :  { %v374_v39 = vpop.f32.mrf.mxu0 }
 0x14d   :  { %v219_v44 = vsel %vm212_vm11, %v374_v39, -inf }
 0x14e   :  { %v193_v40 = vpop.f32.mrf.mxu0  ;;  %v220_v52 = vmax.f32 %v214_v48, %v219_v44 }
 0x14f   :  { %v217_v41 = vsel %vm212_vm11, %v193_v40, -inf }
 0x150   :  { %v377_v42 = vpop.f32.mrf.mxu0  ;;  %v218_v46 = vmax.f32 %v213_v43, %v217_v41 }
 0x151   :  { %v223_v45 = vsel %vm212_vm11, %v377_v42, -inf }
 0x152   :  { %v203_v47 = vpop.f32.mrf.mxu0  ;;  %v224_v53 = vmax.f32 %v216_v49, %v223_v45  ;;  %v225_v55 = vmax.f32 %v218_v46, %v220_v52 }
 0x153   :  { %v221_v51 = vsel %vm212_vm11, %v203_v47, -inf }
 0x154   :  { %v222_v54 = vmax.f32 %v215_v50, %v221_v51 }
 0x156   :  { %v226_v56 = vmax.f32 %v222_v54, %v224_v53 }
 0x158   :  { %v227_v57 = vmax.f32 %v225_v55, %v226_v56 }
 0x15a   :  { %387 = vmatmul.mubr.msk.f32.vlgmr.msra.gmra.mxu1 %vm212_vm11, %v227_v57 }
 0x21a   :  { %v308_v59 = vpop.f32.mrf.mxu1 }
 0x21b   :  { %v309_v60 = vadd.f32 %v341_v58, %v308_v59 }
 0x21c   :  { %v388_v61 = vpop.f32.mrf.mxu1 }
 0x21d   :  { %v343_v62 = vmul.f32 -1.442695, %v309_v60 }
 0x21f   :  { %394 = vpow2.f32 %v343_v62 }
 0x22c   :  { %v395_v63 = vpop.eup %394 }
 0x22d   :  { %v315_v0 = vadd.f32 1.0, %v395_v63 }
 0x22f   :  { %396 = vrcp.f32 %v315_v0 }
 0x23c   :  { %v397_v1 = vpop.eup %396 }
 0x23d   :  { %319 = vst.msk [vmem:[%s511_s4] sm:$0xff] %vm318_vm12, %v397_v1 }

</bundles_post_ra>
